<compile_context>
chip_gen: v5e
topology: v5e:2x2
jax: 0.10.0
libtpu: 0.0.40
codegen_flags: <defaults>
</compile_context>

<pallas_src>
import jax
import jax.numpy as jnp
from jax.experimental import pallas as pl
from jax.experimental.pallas import tpu as pltpu


# ----------------------------------------------------------------------------
# Pallas kernel: transposed per-node linear predictor head
#   W^T : (O, K)  resident
#   b   : (O, 1)  resident (lane-broadcast inside the kernel)
#   X^T : (K, TM) streamed tile over M = B*N
#   Y^T : (O, TM) lane-dense output tile
# ----------------------------------------------------------------------------
def _predictor_kernel(wt_ref, b_ref, xt_ref, ot_ref):
    acc = jnp.dot(wt_ref[...], xt_ref[...], preferred_element_type=jnp.float32)
    ot_ref[...] = (acc + b_ref[...]).astype(ot_ref.dtype)


def _choose_tile_m(M, max_tm):
    """Lane-axis tile for the M = B*N dimension."""
    assert max_tm % 128 == 0
    if M <= max_tm:
        return M          # full-extent block: exempt from the 128 rule
    return max_tm         # multiple of 128; last block (if partial) is masked


def _predictor_matmul_t(xt, wt, b_col, *, max_tm=2048):
    """xt: (K, M) f32, wt: (O, K) f32, b_col: (O, 1) f32 -> (O, M) f32."""
    K, M = xt.shape
    O = wt.shape[0]
    tm = _choose_tile_m(M, max_tm)
    grid_m = pl.cdiv(M, tm)

    cost = pl.CostEstimate(
        flops=2 * M * K * O,
        transcendentals=0,
        bytes_accessed=4 * (M * K + K * O + O + O * M),
    )

    return pl.pallas_call(
        _predictor_kernel,
        out_shape=jax.ShapeDtypeStruct((O, M), jnp.float32),
        grid=(grid_m,),
        in_specs=[
            pl.BlockSpec((O, K), lambda i: (0, 0)),    # W^T : resident
            pl.BlockSpec((O, 1), lambda i: (0, 0)),    # bias: resident
            pl.BlockSpec((K, tm), lambda i: (0, i)),   # X^T : streamed over M
        ],
        out_specs=pl.BlockSpec((O, tm), lambda i: (0, i)),
        compiler_params=pltpu.CompilerParams(
            dimension_semantics=("parallel",),         # shard M tiles on v7x's 2 TCs
        ),
        cost_estimate=cost,
    )(wt, b_col, xt)


# ----------------------------------------------------------------------------
# FlashST forward (mode='ori', generic predictor branch, model != 'DMSTGCN')
# ----------------------------------------------------------------------------
class FlashSTConfig:
    def __init__(self, num_nodes, input_base_dim, input_extra_dim,
                 output_dim, his, pred):
        self.num_nodes = num_nodes
        self.input_base_dim = input_base_dim
        self.input_extra_dim = input_extra_dim
        self.output_dim = output_dim
        self.his = his
        self.pred = pred
        self.dim_in = input_base_dim            # mode == 'ori'


def init_params(cfg: FlashSTConfig, key):
    """Deterministic predictor-head parameters (stand-in predictor weights)."""
    K = cfg.his * cfg.dim_in
    O = cfg.pred * cfg.output_dim
    kw, kb = jax.random.split(key)
    limit = (6.0 / (K + O)) ** 0.5              # Xavier-uniform style
    w = jax.random.uniform(kw, (K, O), jnp.float32, -limit, limit)
    b = jax.random.uniform(kb, (1, O), jnp.float32, -1e-2, 1e-2)
    return {"w": w, "b": b}


def flash_st_forward_ori(cfg: FlashSTConfig, params, source,
                         label=None, select_dataset=None, batch_seen=None,
                         max_tm=2048):
    """source: (B, his, N, C_total) f32 -> (x_predic, None)
       x_predic: (B, pred, N, output_dim) f32."""
    B, T, N, C = source.shape
    assert T == cfg.his and N == cfg.num_nodes

    K = cfg.his * cfg.dim_in
    O = cfg.pred * cfg.output_dim
    M = B * N

    # forward_ori: x = source[..., :input_base_dim]   (channel slice = glue)
    x_base = source[..., : cfg.input_base_dim]             # (B, his, N, dim_in)

    # Single relayout to the lane-dense transposed slab:
    #   rows (sublanes) = his*dim_in, lanes = B*N.
    xt = jnp.transpose(x_base, (1, 3, 0, 2)).reshape(K, M)  # (K, M)

    # Tiny parameter transposes (a few hundred bytes) to the kernel layout.
    wt = jnp.transpose(params["w"])                          # (O, K)
    b_col = jnp.transpose(params["b"])                       # (O, 1)

    yt = _predictor_matmul_t(xt, wt, b_col, max_tm=max_tm)   # (O, M)

    # (pred, output_dim, B, N) -> (B, pred, N, output_dim)
    x_predic = yt.reshape(cfg.pred, cfg.output_dim, B, N).transpose(2, 0, 3, 1)
    return x_predic, None


# ----------------------------------------------------------------------------
def _reference(cfg, params, source):
    """Plain-JAX reference of the same math (no Pallas)."""
    B, _, N, _ = source.shape
    x_base = source[..., : cfg.input_base_dim]
    x2d = jnp.transpose(x_base, (0, 2, 1, 3)).reshape(
        B * N, cfg.his * cfg.dim_in)
    y2d = x2d @ params["w"] + params["b"]
    return y2d.reshape(B, N, cfg.pred, cfg.output_dim).transpose(0, 2, 1, 3)


if __name__ == "__main__":
    key = jax.random.PRNGKey(0)

    # --- Test 1: small shapes, single M block (full-extent lane block) -------
    B = 2
    cfg = FlashSTConfig(num_nodes=16, input_base_dim=1, input_extra_dim=2,
                        output_dim=1, his=8, pred=8)
    k_src, k_lab, k_par, key = jax.random.split(key, 4)
    C_total = cfg.input_base_dim + cfg.input_extra_dim
    source = jax.random.normal(
        k_src, (B, cfg.his, cfg.num_nodes, C_total), jnp.float32)
    label = jax.random.normal(
        k_lab, (B, cfg.pred, cfg.num_nodes, cfg.output_dim), jnp.float32)
    params = init_params(cfg, k_par)

    x_predic, aux = flash_st_forward_ori(cfg, params, source, label, "PEMS04")
    x_predic = jax.block_until_ready(x_predic)
    assert x_predic.shape == (B, cfg.pred, cfg.num_nodes, cfg.output_dim)
    assert aux is None
    ref = _reference(cfg, params, source)
    assert jnp.allclose(x_predic, ref, atol=1e-4, rtol=1e-4)

    # --- Test 2: force multi-tile grid over M (+ masked partial last tile) ---
    B2 = 3
    cfg2 = FlashSTConfig(num_nodes=100, input_base_dim=1, input_extra_dim=2,
                         output_dim=1, his=8, pred=8)
    k_src2, k_par2, key = jax.random.split(key, 3)
    source2 = jax.random.normal(
        k_src2, (B2, cfg2.his, cfg2.num_nodes,
                 cfg2.input_base_dim + cfg2.input_extra_dim), jnp.float32)
    params2 = init_params(cfg2, k_par2)

    # M = 300, tile = 128 -> grid of 3, last block partially out-of-range.
    x_predic2, aux2 = flash_st_forward_ori(
        cfg2, params2, source2, None, "PEMS08", max_tm=128)
    x_predic2 = jax.block_until_ready(x_predic2)
    assert x_predic2.shape == (B2, cfg2.pred, cfg2.num_nodes, cfg2.output_dim)
    assert aux2 is None
    ref2 = _reference(cfg2, params2, source2)
    assert jnp.allclose(x_predic2, ref2, atol=1e-4, rtol=1e-4)

    print("KERNEL_OK")
</pallas_src>

<mosaic_0001>
module attributes {stable_mosaic.version = 11 : i64} {
  func.func @_predictor_kernel(%arg0: i32, %arg1: memref<8x8xf32, #tpu.memory_space<vmem>>, %arg2: memref<8x1xf32, #tpu.memory_space<vmem>>, %arg3: memref<8x32xf32, #tpu.memory_space<vmem>>, %arg4: memref<8x32xf32, #tpu.memory_space<vmem>>) attributes {dimension_semantics = [#tpu.dimension_semantics<parallel>], iteration_bounds = array<i64: 1>, scalar_prefetch = 0 : i64, scratch_operands = 0 : i64, tpu.core_type = #tpu.core_type<tc>, window_params = [{pipeline_mode = #tpu.pipeline_mode<synchronous>, transform_indices = @transform_0, window_bounds = array<i64: 8, 8>}, {pipeline_mode = #tpu.pipeline_mode<synchronous>, transform_indices = @transform_1, window_bounds = array<i64: 8, 1>}, {transform_indices = @transform_2, window_bounds = array<i64: 8, 32>}, {transform_indices = @transform_3, window_bounds = array<i64: 8, 32>}]} {
    %c0 = arith.constant 0 : index
    %c0_0 = arith.constant 0 : index
    %0 = vector.load %arg1[%c0, %c0_0] : memref<8x8xf32, #tpu.memory_space<vmem>>, vector<8x8xf32>
    %c0_1 = arith.constant 0 : index
    %c0_2 = arith.constant 0 : index
    %1 = vector.load %arg3[%c0_1, %c0_2] : memref<8x32xf32, #tpu.memory_space<vmem>>, vector<8x32xf32>
    %cst = arith.constant dense<0.000000e+00> : vector<8x32xf32>
    %2 = tpu.matmul %0, %1, %cst {dimension_numbers = #tpu.dot_dimension_numbers<[1], [0], [0], [1], [0, 0, 1, 1], [], []>} : vector<8x8xf32>, vector<8x32xf32>, vector<8x32xf32> -> vector<8x32xf32>
    %c0_3 = arith.constant 0 : index
    %c0_4 = arith.constant 0 : index
    %3 = vector.load %arg2[%c0_3, %c0_4] : memref<8x1xf32, #tpu.memory_space<vmem>>, vector<8x1xf32>
    %4 = vector.broadcast %3 : vector<8x1xf32> to vector<8x32xf32>
    %5 = arith.addf %2, %4 : vector<8x32xf32>
    %c0_5 = arith.constant 0 : index
    %c0_6 = arith.constant 0 : index
    %6 = vector.load %arg4[%c0_5, %c0_6] : memref<8x32xf32, #tpu.memory_space<vmem>>, vector<8x32xf32>
    tpu.vector_store %arg4[%c0_5, %c0_6], %5 {strides = array<i32>} : memref<8x32xf32, #tpu.memory_space<vmem>>, vector<8x32xf32>,
    return
  }
  func.func @transform_0(%arg0: i32) -> (i32, i32) {
    %c0_i32 = arith.constant 0 : i32
    %c0_i32_0 = arith.constant 0 : i32
    %c0_i32_1 = arith.constant 0 : i32
    return %c0_i32, %c0_i32_0 : i32, i32
  }
  func.func @transform_1(%arg0: i32) -> (i32, i32) {
    %c0_i32 = arith.constant 0 : i32
    %c0_i32_0 = arith.constant 0 : i32
    %c0_i32_1 = arith.constant 0 : i32
    return %c0_i32, %c0_i32_0 : i32, i32
  }
  func.func @transform_2(%arg0: i32) -> (i32, i32) {
    %c0_i32 = arith.constant 0 : i32
    %c0_i32_0 = arith.constant 0 : i32
    return %c0_i32, %arg0 : i32, i32
  }
  func.func @transform_3(%arg0: i32) -> (i32, i32) {
    %c0_i32 = arith.constant 0 : i32
    %c0_i32_0 = arith.constant 0 : i32
    return %c0_i32, %arg0 : i32, i32
  }
}

</mosaic_0001>

<bundles_post_ra>
// kernel: tpu_custom_call.1
= control target key start
LH: loop header
LB: loop body
LE: loop exit
PB: predicated region body
PF: predicated region fallthrough
CT: control target
= control target key end

     0   :  { %8 = vsyncpa [#allocation3], 0  ;;  %s172_s0 = inlined_call_operand.vmem [shape: f32[8,8], index: 0, kind: input, shape index: {}]   ;;  %s173_s1 = inlined_call_operand.vmem [shape: f32[8,1], index: 1, kind: input, shape index: {}]   ;;  %s174_s2 = inlined_call_operand.hbm [shape: f32[8,32], index: 2, kind: input, shape index: {}]   ;;  %s175_s3 = inlined_call_operand.hbm [shape: f32[8,32], index: 3, kind: output, shape index: {}]  }
   0x1   :  { %9 = vsyncpa [#allocation4], 0  ;;  %s19_s14 = sshll.u32 %s174_s2, 4  ;;  %s137_s15 = smov [#allocation2]   ;;  %s20_s14 = int_to_ptr.hbm [resolvable:$true] %s19_s14 }
   0x2   :  { %s21_s16 = sshll.u32 %s137_s15, 4  ;;  %s22_s16 = int_to_ptr.vmem [resolvable:$true] %s21_s16 }
   0x3   :  { %24 = dma.hbm_to_vmem [thread:$0]  %s20_s14, 128, %s22_s16, [#allocation3]  }
   0x4   :  { %133 = dma.done.wait [#allocation3], 128  }
   0x5   :  { %134 = vsyncadd [#allocation3], 4294967168  ;;  %v138_v0 = vmov 0   ;;  %vm37_vm0 = vcmask 64512   ;;  %v30_v1 = vld [vmem:[#allocation2] sm:$0xff]  ;;  %s139_s2 = smov [#allocation5]  }
   0x6   :  { %84 = vset.pattern.permute.xlu0 %v138_v0  ;;  %v29_v2 = vld [vmem:[%s172_s0] sm:$0xff]  ;;  %56 = vmatpush.msra.mxu0 %v30_v1  ;;  %s68_s21 = sshll.u32 %s139_s2, 4  ;;  %s70_s24 = sshll.u32 %s175_s3, 4  ;;  %vm61_vm1 = vcmask 261120   ;;  %s69_s21 = int_to_ptr.vmem [resolvable:$true] %s68_s21  ;;  %s71_s24 = int_to_ptr.hbm [resolvable:$true] %s70_s24 }
   0x7   :  { %v31_v3 = vld [vmem:[%s173_s1] sm:$0xff]  ;;  %80 = vmatmul.msk.f32.vlgmr.msra.gmra.mxu0 %vm37_vm0, %v29_v2 }
   0x8   :  { %34 = vperm.xlu0 %84, %v31_v3  }
  0x7a   :  { %v35_v4 = vpop.permute.xlu0 %34 }
  0x84   :  { %v58_v5 = vpop.f32.mrf.mxu0 }
  0x85   :  { %v59_v6 = vadd.f32 %v58_v5, %v35_v4 }
  0x87   :  { %62 = vst.msk [vmem:[#allocation5] sm:$0xff] %vm61_vm1, %v59_v6 }
  0x88   :  { %73 = dma.vmem_to_hbm [thread:$0]  %s69_s21, 128, %s71_s24, [#allocation4]  }
  0x89   :  { %135 = dma.done.wait [#allocation4], 128  }
  0x8a   :  { %136 = vsyncadd [#allocation4], 4294967168 }
  0x8b   :  { %78 = vsyncpa [#allocation3], 1 }
  0x8c   :  { %79 = vsyncpa [#allocation4], 1 }

</bundles_post_ra>
